<compile_context>
chip_gen: v5e
topology: v5e:2x2
jax: 0.10.0
libtpu: 0.0.40
codegen_flags: <defaults>
</compile_context>

<pallas_src>
import jax
import jax.numpy as jnp
from jax.experimental import pallas as pl
from jax.experimental.pallas import tpu as pltpu

DIM_IN = 64
PACKING_SIZE = 2
D = DIM_IN * PACKING_SIZE            # 128
H1, H2, H3 = D // 2, D // 4, D // 8  # 64, 32, 16
BN_EPS = 1e-5
LRELU_SLOPE = 0.2


def _bn_lrelu_t(h, gamma, beta):
    """BatchNorm1d (training-mode batch stats, biased var) + LeakyReLU(0.2).

    Transposed layout: h is (features, batch), gamma/beta are (features, 1).
    Per-feature statistics are lane-axis (XLU) reductions; the only full-size
    (F, B) elementwise work is one scale/shift and one maximum.
    """
    mean = jnp.mean(h, axis=1, keepdims=True)            # (F, 1)
    mean_sq = jnp.mean(h * h, axis=1, keepdims=True)     # (F, 1)
    var = jnp.maximum(mean_sq - mean * mean, 0.0)        # biased variance
    scale = gamma * jax.lax.rsqrt(var + BN_EPS)          # gamma folded, (F, 1)
    shift = beta - mean * scale                          # (F, 1)
    hn = h * scale + shift                               # (F, B)
    return jnp.maximum(hn, LRELU_SLOPE * hn)             # LeakyReLU(0.2)


def discriminator_kernel(
    xt_ref,
    w1_ref, g1_ref, be1_ref,
    w2_ref, g2_ref, be2_ref,
    w3_ref, g3_ref, be3_ref,
    ot_ref,
):
    xt = xt_ref[...]                                                   # (D, B)

    # Linear biases omitted on purpose: exactly cancelled by the BN mean
    # subtraction that immediately follows each Linear (training-mode BN).
    h = jnp.dot(w1_ref[...], xt, preferred_element_type=jnp.float32)   # (H1, B)
    h = _bn_lrelu_t(h, g1_ref[...], be1_ref[...])

    h = jnp.dot(w2_ref[...], h, preferred_element_type=jnp.float32)    # (H2, B)
    h = _bn_lrelu_t(h, g2_ref[...], be2_ref[...])

    h = jnp.dot(w3_ref[...], h, preferred_element_type=jnp.float32)    # (H3, B)
    h = _bn_lrelu_t(h, g3_ref[...], be3_ref[...])

    # Softmax over features (axis 0 in transposed layout).
    m = jnp.max(h, axis=0, keepdims=True)                              # (1, B)
    e = jnp.exp(h - m)
    s = jnp.sum(e, axis=0, keepdims=True)                              # (1, B)
    ot_ref[...] = (e * pl.reciprocal(s, approx=True)).astype(ot_ref.dtype)


def discriminator_forward(x, kernel_params):
    """x: (B, 128) float32 -> (B, 16) float32 softmax probabilities."""
    B = x.shape[0]
    xt = x.T  # one-time layout plumbing: batch onto the 128-lane axis
    vmem_spec = pl.BlockSpec(memory_space=pltpu.MemorySpace.VMEM)
    n_in = 1 + len(kernel_params)
    ot = pl.pallas_call(
        discriminator_kernel,
        out_shape=jax.ShapeDtypeStruct((H3, B), jnp.float32),
        in_specs=[vmem_spec] * n_in,
        out_specs=vmem_spec,
        compiler_params=pltpu.CompilerParams(vmem_limit_bytes=32 * 1024 * 1024),
    )(xt, *kernel_params)
    return ot.T


def init_params(key):
    """Parameter init mimicking PyTorch defaults.

    Linear: weight (fan_out, fan_in) ~ U(-1/sqrt(fan_in), 1/sqrt(fan_in))
    (PyTorch layout, used directly as the transposed-layout matmul LHS);
    bias same distribution, kept ONLY for the pure-JAX reference (it is not
    passed to the kernel because BN cancels it exactly).
    BatchNorm1d: gamma=1, beta=0, stored as (fan_out, 1) for the transposed layout.
    """
    keys = jax.random.split(key, 6)
    kernel_params = []
    biases = []
    dims = [(D, H1), (H1, H2), (H2, H3)]
    for i, (fan_in, fan_out) in enumerate(dims):
        bound = 1.0 / jnp.sqrt(float(fan_in))
        w = jax.random.uniform(keys[2 * i], (fan_out, fan_in), jnp.float32,
                               minval=-bound, maxval=bound)
        b = jax.random.uniform(keys[2 * i + 1], (1, fan_out), jnp.float32,
                               minval=-bound, maxval=bound)
        gamma = jnp.ones((fan_out, 1), jnp.float32)
        beta = jnp.zeros((fan_out, 1), jnp.float32)
        kernel_params.extend([w, gamma, beta])
        biases.append(b)
    return kernel_params, biases


def discriminator_reference(x, kernel_params, biases):
    """Pure-JAX reference replicating the PyTorch forward literally
    (biases included, two-pass variance, where-based LeakyReLU, exact softmax)."""
    w1, g1, be1, w2, g2, be2, w3, g3, be3 = kernel_params
    b1, b2, b3 = biases

    def bn_lrelu(h, gamma, beta):
        mean = jnp.mean(h, axis=0, keepdims=True)
        var = jnp.mean((h - mean) ** 2, axis=0, keepdims=True)
        hn = (h - mean) / jnp.sqrt(var + BN_EPS)
        hn = hn * gamma.T + beta.T
        return jnp.where(hn >= 0.0, hn, LRELU_SLOPE * hn)

    h = x @ w1.T + b1
    h = bn_lrelu(h, g1, be1)
    h = h @ w2.T + b2
    h = bn_lrelu(h, g2, be2)
    h = h @ w3.T + b3
    h = bn_lrelu(h, g3, be3)
    return jax.nn.softmax(h, axis=1)


if __name__ == "__main__":
    key = jax.random.PRNGKey(0)
    k_x, k_p = jax.random.split(key)

    # Batch chosen as a multiple of 128 so the transposed activations / output
    # are lane-dense; still tiny (x is 128 KB).
    B = 256
    x = jax.random.normal(k_x, (B, D), dtype=jnp.float32)
    kernel_params, biases = init_params(k_p)

    out = jax.block_until_ready(discriminator_forward(x, kernel_params))
    ref = discriminator_reference(x, kernel_params, biases)

    assert out.shape == (B, H3)
    # Rows of the softmax output must sum to ~1 (approx reciprocal in kernel).
    assert bool(jnp.allclose(jnp.sum(out, axis=1), 1.0, atol=1e-2))
    # Kernel (bias-free, folded BN, approx reciprocal) vs literal PyTorch math.
    assert bool(jnp.allclose(out, ref, atol=1e-2, rtol=1e-2))

    print("KERNEL_OK")
</pallas_src>

<mosaic_0001>
module attributes {stable_mosaic.version = 11 : i64} {
  func.func @discriminator_kernel(%arg0: memref<128x256xf32, #tpu.memory_space<vmem>>, %arg1: memref<64x128xf32, #tpu.memory_space<vmem>>, %arg2: memref<64x1xf32, #tpu.memory_space<vmem>>, %arg3: memref<64x1xf32, #tpu.memory_space<vmem>>, %arg4: memref<32x64xf32, #tpu.memory_space<vmem>>, %arg5: memref<32x1xf32, #tpu.memory_space<vmem>>, %arg6: memref<32x1xf32, #tpu.memory_space<vmem>>, %arg7: memref<16x32xf32, #tpu.memory_space<vmem>>, %arg8: memref<16x1xf32, #tpu.memory_space<vmem>>, %arg9: memref<16x1xf32, #tpu.memory_space<vmem>>, %arg10: memref<16x256xf32, #tpu.memory_space<vmem>>) attributes {dimension_semantics = [], scalar_prefetch = 0 : i64, scratch_operands = 0 : i64, tpu.core_type = #tpu.core_type<tc>} {
    %c0 = arith.constant 0 : index
    %c0_0 = arith.constant 0 : index
    %0 = vector.load %arg0[%c0, %c0_0] : memref<128x256xf32, #tpu.memory_space<vmem>>, vector<128x256xf32>
    %c0_1 = arith.constant 0 : index
    %c0_2 = arith.constant 0 : index
    %1 = vector.load %arg1[%c0_1, %c0_2] : memref<64x128xf32, #tpu.memory_space<vmem>>, vector<64x128xf32>
    %cst = arith.constant dense<0.000000e+00> : vector<64x256xf32>
    %2 = tpu.matmul %1, %0, %cst {dimension_numbers = #tpu.dot_dimension_numbers<[1], [0], [0], [1], [0, 0, 1, 1], [], []>} : vector<64x128xf32>, vector<128x256xf32>, vector<64x256xf32> -> vector<64x256xf32>
    %c0_3 = arith.constant 0 : index
    %c0_4 = arith.constant 0 : index
    %3 = vector.load %arg2[%c0_3, %c0_4] : memref<64x1xf32, #tpu.memory_space<vmem>>, vector<64x1xf32>
    %c0_5 = arith.constant 0 : index
    %c0_6 = arith.constant 0 : index
    %4 = vector.load %arg3[%c0_5, %c0_6] : memref<64x1xf32, #tpu.memory_space<vmem>>, vector<64x1xf32>
    %cst_7 = arith.constant dense<0.000000e+00> : vector<64xf32>
    %5 = vector.multi_reduction <add>, %2, %cst_7 [1] : vector<64x256xf32> to vector<64xf32>
    %6 = vector.shape_cast %5 : vector<64xf32> to vector<64x1xf32>
    %cst_8 = arith.constant 2.560000e+02 : f32
    %7 = vector.broadcast %cst_8 : f32 to vector<64x1xf32>
    %8 = arith.divf %6, %7 : vector<64x1xf32>
    %9 = arith.mulf %2, %2 : vector<64x256xf32>
    %cst_9 = arith.constant dense<0.000000e+00> : vector<64xf32>
    %10 = vector.multi_reduction <add>, %9, %cst_9 [1] : vector<64x256xf32> to vector<64xf32>
    %11 = vector.shape_cast %10 : vector<64xf32> to vector<64x1xf32>
    %cst_10 = arith.constant 2.560000e+02 : f32
    %12 = vector.broadcast %cst_10 : f32 to vector<64x1xf32>
    %13 = arith.divf %11, %12 : vector<64x1xf32>
    %14 = arith.mulf %8, %8 : vector<64x1xf32>
    %15 = arith.subf %13, %14 : vector<64x1xf32>
    %cst_11 = arith.constant 0.000000e+00 : f32
    %16 = vector.broadcast %cst_11 : f32 to vector<64x1xf32>
    %17 = arith.maximumf %15, %16 : vector<64x1xf32>
    %cst_12 = arith.constant 9.99999974E-6 : f32
    %18 = vector.broadcast %cst_12 : f32 to vector<64x1xf32>
    %19 = arith.addf %17, %18 : vector<64x1xf32>
    %20 = math.rsqrt %19 : vector<64x1xf32>
    %21 = arith.mulf %3, %20 : vector<64x1xf32>
    %22 = arith.mulf %8, %21 : vector<64x1xf32>
    %23 = arith.subf %4, %22 : vector<64x1xf32>
    %24 = vector.broadcast %21 : vector<64x1xf32> to vector<64x256xf32>
    %25 = arith.mulf %2, %24 : vector<64x256xf32>
    %26 = vector.broadcast %23 : vector<64x1xf32> to vector<64x256xf32>
    %27 = arith.addf %25, %26 : vector<64x256xf32>
    %cst_13 = arith.constant 2.000000e-01 : f32
    %28 = vector.broadcast %cst_13 : f32 to vector<64x256xf32>
    %29 = arith.mulf %28, %27 : vector<64x256xf32>
    %30 = arith.maximumf %27, %29 : vector<64x256xf32>
    %c0_14 = arith.constant 0 : index
    %c0_15 = arith.constant 0 : index
    %31 = vector.load %arg4[%c0_14, %c0_15] : memref<32x64xf32, #tpu.memory_space<vmem>>, vector<32x64xf32>
    %cst_16 = arith.constant dense<0.000000e+00> : vector<32x256xf32>
    %32 = tpu.matmul %31, %30, %cst_16 {dimension_numbers = #tpu.dot_dimension_numbers<[1], [0], [0], [1], [0, 0, 1, 1], [], []>} : vector<32x64xf32>, vector<64x256xf32>, vector<32x256xf32> -> vector<32x256xf32>
    %c0_17 = arith.constant 0 : index
    %c0_18 = arith.constant 0 : index
    %33 = vector.load %arg5[%c0_17, %c0_18] : memref<32x1xf32, #tpu.memory_space<vmem>>, vector<32x1xf32>
    %c0_19 = arith.constant 0 : index
    %c0_20 = arith.constant 0 : index
    %34 = vector.load %arg6[%c0_19, %c0_20] : memref<32x1xf32, #tpu.memory_space<vmem>>, vector<32x1xf32>
    %cst_21 = arith.constant dense<0.000000e+00> : vector<32xf32>
    %35 = vector.multi_reduction <add>, %32, %cst_21 [1] : vector<32x256xf32> to vector<32xf32>
    %36 = vector.shape_cast %35 : vector<32xf32> to vector<32x1xf32>
    %cst_22 = arith.constant 2.560000e+02 : f32
    %37 = vector.broadcast %cst_22 : f32 to vector<32x1xf32>
    %38 = arith.divf %36, %37 : vector<32x1xf32>
    %39 = arith.mulf %32, %32 : vector<32x256xf32>
    %cst_23 = arith.constant dense<0.000000e+00> : vector<32xf32>
    %40 = vector.multi_reduction <add>, %39, %cst_23 [1] : vector<32x256xf32> to vector<32xf32>
    %41 = vector.shape_cast %40 : vector<32xf32> to vector<32x1xf32>
    %cst_24 = arith.constant 2.560000e+02 : f32
    %42 = vector.broadcast %cst_24 : f32 to vector<32x1xf32>
    %43 = arith.divf %41, %42 : vector<32x1xf32>
    %44 = arith.mulf %38, %38 : vector<32x1xf32>
    %45 = arith.subf %43, %44 : vector<32x1xf32>
    %cst_25 = arith.constant 0.000000e+00 : f32
    %46 = vector.broadcast %cst_25 : f32 to vector<32x1xf32>
    %47 = arith.maximumf %45, %46 : vector<32x1xf32>
    %cst_26 = arith.constant 9.99999974E-6 : f32
    %48 = vector.broadcast %cst_26 : f32 to vector<32x1xf32>
    %49 = arith.addf %47, %48 : vector<32x1xf32>
    %50 = math.rsqrt %49 : vector<32x1xf32>
    %51 = arith.mulf %33, %50 : vector<32x1xf32>
    %52 = arith.mulf %38, %51 : vector<32x1xf32>
    %53 = arith.subf %34, %52 : vector<32x1xf32>
    %54 = vector.broadcast %51 : vector<32x1xf32> to vector<32x256xf32>
    %55 = arith.mulf %32, %54 : vector<32x256xf32>
    %56 = vector.broadcast %53 : vector<32x1xf32> to vector<32x256xf32>
    %57 = arith.addf %55, %56 : vector<32x256xf32>
    %cst_27 = arith.constant 2.000000e-01 : f32
    %58 = vector.broadcast %cst_27 : f32 to vector<32x256xf32>
    %59 = arith.mulf %58, %57 : vector<32x256xf32>
    %60 = arith.maximumf %57, %59 : vector<32x256xf32>
    %c0_28 = arith.constant 0 : index
    %c0_29 = arith.constant 0 : index
    %61 = vector.load %arg7[%c0_28, %c0_29] : memref<16x32xf32, #tpu.memory_space<vmem>>, vector<16x32xf32>
    %cst_30 = arith.constant dense<0.000000e+00> : vector<16x256xf32>
    %62 = tpu.matmul %61, %60, %cst_30 {dimension_numbers = #tpu.dot_dimension_numbers<[1], [0], [0], [1], [0, 0, 1, 1], [], []>} : vector<16x32xf32>, vector<32x256xf32>, vector<16x256xf32> -> vector<16x256xf32>
    %c0_31 = arith.constant 0 : index
    %c0_32 = arith.constant 0 : index
    %63 = vector.load %arg8[%c0_31, %c0_32] : memref<16x1xf32, #tpu.memory_space<vmem>>, vector<16x1xf32>
    %c0_33 = arith.constant 0 : index
    %c0_34 = arith.constant 0 : index
    %64 = vector.load %arg9[%c0_33, %c0_34] : memref<16x1xf32, #tpu.memory_space<vmem>>, vector<16x1xf32>
    %cst_35 = arith.constant dense<0.000000e+00> : vector<16xf32>
    %65 = vector.multi_reduction <add>, %62, %cst_35 [1] : vector<16x256xf32> to vector<16xf32>
    %66 = vector.shape_cast %65 : vector<16xf32> to vector<16x1xf32>
    %cst_36 = arith.constant 2.560000e+02 : f32
    %67 = vector.broadcast %cst_36 : f32 to vector<16x1xf32>
    %68 = arith.divf %66, %67 : vector<16x1xf32>
    %69 = arith.mulf %62, %62 : vector<16x256xf32>
    %cst_37 = arith.constant dense<0.000000e+00> : vector<16xf32>
    %70 = vector.multi_reduction <add>, %69, %cst_37 [1] : vector<16x256xf32> to vector<16xf32>
    %71 = vector.shape_cast %70 : vector<16xf32> to vector<16x1xf32>
    %cst_38 = arith.constant 2.560000e+02 : f32
    %72 = vector.broadcast %cst_38 : f32 to vector<16x1xf32>
    %73 = arith.divf %71, %72 : vector<16x1xf32>
    %74 = arith.mulf %68, %68 : vector<16x1xf32>
    %75 = arith.subf %73, %74 : vector<16x1xf32>
    %cst_39 = arith.constant 0.000000e+00 : f32
    %76 = vector.broadcast %cst_39 : f32 to vector<16x1xf32>
    %77 = arith.maximumf %75, %76 : vector<16x1xf32>
    %cst_40 = arith.constant 9.99999974E-6 : f32
    %78 = vector.broadcast %cst_40 : f32 to vector<16x1xf32>
    %79 = arith.addf %77, %78 : vector<16x1xf32>
    %80 = math.rsqrt %79 : vector<16x1xf32>
    %81 = arith.mulf %63, %80 : vector<16x1xf32>
    %82 = arith.mulf %68, %81 : vector<16x1xf32>
    %83 = arith.subf %64, %82 : vector<16x1xf32>
    %84 = vector.broadcast %81 : vector<16x1xf32> to vector<16x256xf32>
    %85 = arith.mulf %62, %84 : vector<16x256xf32>
    %86 = vector.broadcast %83 : vector<16x1xf32> to vector<16x256xf32>
    %87 = arith.addf %85, %86 : vector<16x256xf32>
    %cst_41 = arith.constant 2.000000e-01 : f32
    %88 = vector.broadcast %cst_41 : f32 to vector<16x256xf32>
    %89 = arith.mulf %88, %87 : vector<16x256xf32>
    %90 = arith.maximumf %87, %89 : vector<16x256xf32>
    %cst_42 = arith.constant dense<0xFF800000> : vector<256xf32>
    %91 = vector.multi_reduction <maximumf>, %90, %cst_42 [0] : vector<16x256xf32> to vector<256xf32>
    %92 = vector.shape_cast %91 : vector<256xf32> to vector<1x256xf32>
    %93 = vector.broadcast %92 : vector<1x256xf32> to vector<16x256xf32>
    %94 = arith.subf %90, %93 : vector<16x256xf32>
    %95 = math.exp %94 : vector<16x256xf32>
    %cst_43 = arith.constant dense<0.000000e+00> : vector<256xf32>
    %96 = vector.multi_reduction <add>, %95, %cst_43 [0] : vector<16x256xf32> to vector<256xf32>
    %97 = vector.shape_cast %96 : vector<256xf32> to vector<1x256xf32>
    %98 = tpu.reciprocal %97 {approx = true} : vector<1x256xf32> -> vector<1x256xf32>
    %99 = vector.broadcast %98 : vector<1x256xf32> to vector<16x256xf32>
    %100 = arith.mulf %95, %99 : vector<16x256xf32>
    %c0_44 = arith.constant 0 : index
    %c0_45 = arith.constant 0 : index
    %101 = vector.load %arg10[%c0_44, %c0_45] : memref<16x256xf32, #tpu.memory_space<vmem>>, vector<16x256xf32>
    tpu.vector_store %arg10[%c0_44, %c0_45], %100 {strides = array<i32>} : memref<16x256xf32, #tpu.memory_space<vmem>>, vector<16x256xf32>,
    return
  }
}

</mosaic_0001>

<bundles_post_ra>
// kernel: tpu_custom_call.1
= control target key start
LH: loop header
LB: loop body
LE: loop exit
PB: predicated region body
PF: predicated region fallthrough
CT: control target
= control target key end

     0   :  { %15 = vsyncpa [#allocation3], 0  ;;  %s1645_s0 = inlined_call_operand.hbm [shape: f32[128,256], index: 0, kind: input, shape index: {}]   ;;  %s1646_s1 = inlined_call_operand.vmem [shape: f32[64,128], index: 1, kind: input, shape index: {}]   ;;  %s1647_s2 = inlined_call_operand.vmem [shape: f32[64,1], index: 2, kind: input, shape index: {}]   ;;  %s1648_s3 = inlined_call_operand.vmem [shape: f32[64,1], index: 3, kind: input, shape index: {}]   ;;  %s1649_s4 = inlined_call_operand.vmem [shape: f32[32,64], index: 4, kind: input, shape index: {}]   ;;  %s1650_s5 = inlined_call_operand.vmem [shape: f32[32,1], index: 5, kind: input, shape index: {}]   ;;  %s1651_s6 = inlined_call_operand.vmem [shape: f32[32,1], index: 6, kind: input, shape index: {}]   ;;  %s1652_s7 = inlined_call_operand.vmem [shape: f32[16,32], index: 7, kind: input, shape index: {}]   ;;  %s1653_s8 = inlined_call_operand.vmem [shape: f32[16,1], index: 8, kind: input, shape index: {}]   ;;  %s1654_s9 = inlined_call_operand.vmem [shape: f32[16,1], index: 9, kind: input, shape index: {}]   ;;  %s1655_s10 = inlined_call_operand.hbm [shape: f32[16,256], index: 10, kind: output, shape index: {}]  }
   0x1   :  { %16 = vsyncpa [#allocation4], 0  ;;  %s21_s15 = sshll.u32 %s1645_s0, 4  ;;  %s1153_s16 = smov [#allocation2]   ;;  %s22_s15 = int_to_ptr.hbm [resolvable:$true] %s21_s15 }
   0x2   :  { %s23_s17 = sshll.u32 %s1153_s16, 4  ;;  %s1154_s18 = smov 256   ;;  %s24_s17 = int_to_ptr.vmem [resolvable:$true] %s23_s17 }
   0x3   :  { %s1155_s19 = smov 16  }
   0x4   :  { %29 = dma.hbm_to_vmem [thread:$0]  %s22_s15, 4096, %s24_s17, [#allocation3], %s1154_s18, %s1154_s18, %s1155_s19  }
   0x5   :  { %1149 = dma.done.wait [#allocation3], 4096  }
   0x6   :  { %1150 = vsyncadd [#allocation3], 4294963200  ;;  %v82_v0 = vld [vmem:[#allocation2 + $0xf0] sm:$0xff]  ;;  %v83_v1 = vld [vmem:[#allocation2 + $0xf8] sm:$0xff]  ;;  %s1025_s15 = sshll.u32 %s1655_s10, 4  ;;  %s1026_s15 = int_to_ptr.hbm [resolvable:$true] %s1025_s15 }
   0x7   :  { %v80_v2 = vld [vmem:[#allocation2 + $0xe0] sm:$0xff]  ;;  %92 = vmatpush.msra.mxu0 %v82_v0  ;;  %133 = vmatpush.msra.mxu1 %v83_v1  ;;  %v81_v3 = vld [vmem:[#allocation2 + $0xe8] sm:$0xff]  ;;  %v78_v4 = vld [vmem:[#allocation2 + $0xd0] sm:$0xff] }
   0x8   :  { %v79_v5 = vld [vmem:[#allocation2 + $0xd8] sm:$0xff]  ;;  %v76_v6 = vld [vmem:[#allocation2 + $0xc0] sm:$0xff]  ;;  %v77_v7 = vld [vmem:[#allocation2 + $0xc8] sm:$0xff] }
   0x9   :  { %93 = vmatpush.msra.mxu0 %v80_v2  ;;  %134 = vmatpush.msra.mxu1 %v81_v3  ;;  %v74_v8 = vld [vmem:[#allocation2 + $0xb0] sm:$0xff]  ;;  %v75_v9 = vld [vmem:[#allocation2 + $0xb8] sm:$0xff]  ;;  %v72_v10 = vld [vmem:[#allocation2 + $0xa0] sm:$0xff] }
   0xa   :  { %v73_v11 = vld [vmem:[#allocation2 + $0xa8] sm:$0xff]  ;;  %v70_v12 = vld [vmem:[#allocation2 + $0x90] sm:$0xff]  ;;  %v71_v13 = vld [vmem:[#allocation2 + $0x98] sm:$0xff] }
   0xb   :  { %94 = vmatpush.msra.mxu0 %v78_v4  ;;  %135 = vmatpush.msra.mxu1 %v79_v5  ;;  %v68_v14 = vld [vmem:[#allocation2 + $0x80] sm:$0xff]  ;;  %v69_v15 = vld [vmem:[#allocation2 + $0x88] sm:$0xff]  ;;  %v66_v16 = vld [vmem:[#allocation2 + $0x70] sm:$0xff] }
   0xc   :  { %v67_v17 = vld [vmem:[#allocation2 + $0x78] sm:$0xff]  ;;  %v64_v18 = vld [vmem:[#allocation2 + $0x60] sm:$0xff]  ;;  %v65_v19 = vld [vmem:[#allocation2 + $0x68] sm:$0xff] }
   0xd   :  { %95 = vmatpush.msra.mxu0 %v76_v6  ;;  %136 = vmatpush.msra.mxu1 %v77_v7  ;;  %v62_v20 = vld [vmem:[#allocation2 + $0x50] sm:$0xff]  ;;  %v63_v21 = vld [vmem:[#allocation2 + $0x58] sm:$0xff]  ;;  %v60_v22 = vld [vmem:[#allocation2 + $0x40] sm:$0xff] }
   0xe   :  { %v61_v23 = vld [vmem:[#allocation2 + $0x48] sm:$0xff]  ;;  %v58_v24 = vld [vmem:[#allocation2 + $0x30] sm:$0xff]  ;;  %v59_v25 = vld [vmem:[#allocation2 + $0x38] sm:$0xff] }
   0xf   :  { %96 = vmatpush.msra.mxu0 %v74_v8  ;;  %137 = vmatpush.msra.mxu1 %v75_v9  ;;  %v56_v26 = vld [vmem:[#allocation2 + $0x20] sm:$0xff]  ;;  %v57_v27 = vld [vmem:[#allocation2 + $0x28] sm:$0xff]  ;;  %v54_v28 = vld [vmem:[#allocation2 + $0x10] sm:$0xff] }
  0x10   :  { %v55_v29 = vld [vmem:[#allocation2 + $0x18] sm:$0xff]  ;;  %v52_v30 = vld [vmem:[#allocation2] sm:$0xff]  ;;  %v53_v31 = vld [vmem:[#allocation2 + $0x8] sm:$0xff] }
  0x11   :  { %97 = vmatpush.msra.mxu0 %v72_v10  ;;  %138 = vmatpush.msra.mxu1 %v73_v11  ;;  %v84_v32 = vld [vmem:[%s1646_s1] sm:$0xff]  ;;  %v85_v33 = vld [vmem:[%s1646_s1 + $0x8] sm:$0xff]  ;;  %v86_v34 = vld [vmem:[%s1646_s1 + $0x10] sm:$0xff] }
  0x12   :  { %v87_v35 = vld [vmem:[%s1646_s1 + $0x18] sm:$0xff]  ;;  %v88_v36 = vld [vmem:[%s1646_s1 + $0x20] sm:$0xff]  ;;  %v89_v37 = vld [vmem:[%s1646_s1 + $0x28] sm:$0xff] }
  0x13   :  { %98 = vmatpush.msra.mxu0 %v70_v12  ;;  %139 = vmatpush.msra.mxu1 %v71_v13  ;;  %v90_v38 = vld [vmem:[%s1646_s1 + $0x30] sm:$0xff]  ;;  %v91_v39 = vld [vmem:[%s1646_s1 + $0x38] sm:$0xff] }
  0x15   :  { %99 = vmatpush.msra.mxu0 %v68_v14  ;;  %140 = vmatpush.msra.mxu1 %v69_v15 }
  0x17   :  { %100 = vmatpush.msra.mxu0 %v66_v16  ;;  %141 = vmatpush.msra.mxu1 %v67_v17 }
  0x19   :  { %101 = vmatpush.msra.mxu0 %v64_v18  ;;  %142 = vmatpush.msra.mxu1 %v65_v19 }
  0x1b   :  { %102 = vmatpush.msra.mxu0 %v62_v20  ;;  %143 = vmatpush.msra.mxu1 %v63_v21 }
  0x1d   :  { %103 = vmatpush.msra.mxu0 %v60_v22  ;;  %144 = vmatpush.msra.mxu1 %v61_v23 }
  0x1f   :  { %104 = vmatpush.msra.mxu0 %v58_v24  ;;  %145 = vmatpush.msra.mxu1 %v59_v25  ;;  %v1156_v24 = vmov 256.0  }
  0x20   :  { %1059 = vrcp.f32 %v1156_v24  ;;  %v177_v24 = vld [vmem:[%s1647_s2 + $0x18] sm:$0xff] }
  0x21   :  { %105 = vmatpush.msra.mxu0 %v56_v26  ;;  %146 = vmatpush.msra.mxu1 %v57_v27 }
  0x23   :  { %106 = vmatpush.msra.mxu0 %v54_v28  ;;  %147 = vmatpush.msra.mxu1 %v55_v29 }
  0x25   :  { %107 = vmatpush.msra.mxu0 %v52_v30  ;;  %148 = vmatpush.msra.mxu1 %v53_v31 }
  0x26   :  { %108 = vmatmul.f32.vlgmr.msra.gmra.mxu0 %v84_v32  ;;  %149 = vmatmul.f32.vlgmr.msra.gmra.mxu1 %v84_v32  ;;  %v1060_v25 = vpop.eup %1059 }
  0x27   :  { %v215_v26 = vmul.f32 256.0, %v1060_v25  ;;  %vm219_vm0 = vweird.f32 %v1060_v25 }
  0x29   :  { %v216_v27 = vsub.f32 1.0, %v215_v26 }
  0x2b   :  { %v217_v28 = vmul.f32 %v1060_v25, %v216_v27 }
  0x2d   :  { %v218_v29 = vadd.f32 %v1060_v25, %v217_v28 }
  0x2e   :  { %111 = vmatmul.f32.gmra.mxu0 %v85_v33  ;;  %152 = vmatmul.f32.gmra.mxu1 %v85_v33 }
  0x2f   :  { %v1324_v32 = vsel %vm219_vm0, %v1060_v25, %v218_v29 }
  0x36   :  { %114 = vmatmul.f32.gmra.mxu0 %v86_v34  ;;  %155 = vmatmul.f32.gmra.mxu1 %v86_v34  ;;  %v1157_v34 = vmov 0  }
  0x37   :  { %1057 = vset.pattern.permute.xlu2 %v1157_v34  ;;  %1058 = vset.pattern.permute.xlu1 %v1157_v34 }
  0x38   :  { %1056 = vset.pattern.permute.xlu0 %v1157_v34 }
  0x3e   :  { %117 = vmatmul.f32.gmra.mxu0 %v87_v35  ;;  %158 = vmatmul.f32.gmra.mxu1 %v87_v35 }
  0x46   :  { %120 = vmatmul.f32.gmra.mxu0 %v88_v36  ;;  %161 = vmatmul.f32.gmra.mxu1 %v88_v36 }
  0x4e   :  { %123 = vmatmul.f32.gmra.mxu0 %v89_v37  ;;  %164 = vmatmul.f32.gmra.mxu1 %v89_v37 }
  0x56   :  { %126 = vmatmul.f32.gmra.mxu0 %v90_v38  ;;  %167 = vmatmul.f32.gmra.mxu1 %v90_v38 }
  0x5e   :  { %129 = vmatmul.f32.gmra.mxu0 %v91_v39  ;;  %170 = vmatmul.f32.gmra.mxu1 %v91_v39 }
  0xa3   :  { %v1244_v40 = vpop.f32.mrf.mxu0  ;;  %v1246_v41 = vpop.f32.mrf.mxu1 }
  0xa4   :  { %v190_v19 = vadd.f32 %v1246_v41, %v1244_v40  ;;  %v229_v21 = vmul.f32 %v1244_v40, %v1244_v40  ;;  %v230_v22 = vmul.f32 %v1246_v41, %v1246_v41 }
  0xa6   :  { %v245_v23 = vadd.f32 %v230_v22, %v229_v21 }
  0xab   :  { %v1248_v42 = vpop.f32.mrf.mxu0  ;;  %v1250_v43 = vpop.f32.mrf.mxu1 }
  0xac   :  { %v193_v44 = vadd.f32 %v1250_v43, %v1248_v42  ;;  %v231_v8 = vmul.f32 %v1248_v42, %v1248_v42  ;;  %v232_v9 = vmul.f32 %v1250_v43, %v1250_v43 }
  0xae   :  { %194 = vadd.xlane.f32.xlu2 %v193_v44  ;;  %v248_v15 = vadd.f32 %v232_v9, %v231_v8 }
  0xb3   :  { %v1254_v45 = vpop.f32.mrf.mxu0  ;;  %v1256_v46 = vpop.f32.mrf.mxu1 }
  0xb4   :  { %v196_v47 = vadd.f32 %v1256_v46, %v1254_v45  ;;  %v233_v17 = vmul.f32 %v1254_v45, %v1254_v45  ;;  %v234_v18 = vmul.f32 %v1256_v46, %v1256_v46 }
  0xb6   :  { %197 = vadd.xlane.f32.xlu0 %v196_v47  ;;  %v251_v20 = vadd.f32 %v234_v18, %v233_v17 }
  0xbb   :  { %v1260_v48 = vpop.f32.mrf.mxu0  ;;  %v1262_v49 = vpop.f32.mrf.mxu1 }
  0xbc   :  { %v199_v50 = vadd.f32 %v1262_v49, %v1260_v48  ;;  %v235_v51 = vmul.f32 %v1260_v48, %v1260_v48  ;;  %v236_v52 = vmul.f32 %v1262_v49, %v1262_v49 }
  0xbe   :  { %200 = vadd.xlane.f32.xlu1 %v199_v50  ;;  %v254_v55 = vadd.f32 %v236_v52, %v235_v51 }
  0xc3   :  { %v1270_v53 = vpop.f32.mrf.mxu0  ;;  %v1272_v54 = vpop.f32.mrf.mxu1 }
  0xc4   :  { %v202_v56 = vadd.f32 %v1272_v54, %v1270_v53  ;;  %v237_v57 = vmul.f32 %v1270_v53, %v1270_v53  ;;  %v238_v58 = vmul.f32 %v1272_v54, %v1272_v54 }
  0xc6   :  { %255 = vadd.xlane.f32.xlu1 %v254_v55  ;;  %203 = vadd.xlane.f32.xlu2 %v202_v56  ;;  %v257_v61 = vadd.f32 %v238_v58, %v237_v57 }
  0xcb   :  { %v1280_v59 = vpop.f32.mrf.mxu0  ;;  %v1282_v60 = vpop.f32.mrf.mxu1 }
  0xcc   :  { %v205_v62 = vadd.f32 %v1282_v60, %v1280_v59  ;;  %v239_v63 = vmul.f32 %v1280_v59, %v1280_v59  ;;  %v240_v0 = vmul.f32 %v1282_v60, %v1282_v60 }
  0xce   :  { %258 = vadd.xlane.f32.xlu2 %v257_v61  ;;  %206 = vadd.xlane.f32.xlu1 %v205_v62  ;;  %v260_v1 = vadd.f32 %v240_v0, %v239_v63 }
  0xd0   :  { %261 = vadd.xlane.f32.xlu0 %v260_v1 }
  0xd3   :  { %v1290_v2 = vpop.f32.mrf.mxu0  ;;  %v1292_v3 = vpop.f32.mrf.mxu1 }
  0xd4   :  { %v241_v4 = vmul.f32 %v1290_v2, %v1290_v2  ;;  %v242_v5 = vmul.f32 %v1292_v3, %v1292_v3  ;;  %v208_v6 = vadd.f32 %v1292_v3, %v1290_v2 }
  0xd6   :  { %v263_v7 = vadd.f32 %v242_v5, %v241_v4 }
  0xd8   :  { %264 = vadd.xlane.f32.xlu2 %v263_v7  ;;  %209 = vadd.xlane.f32.xlu0 %v208_v6 }
  0xdb   :  { %v1304_v10 = vpop.f32.mrf.mxu0  ;;  %v1306_v11 = vpop.f32.mrf.mxu1 }
  0xdc   :  { %v243_v12 = vmul.f32 %v1304_v10, %v1304_v10  ;;  %v244_v13 = vmul.f32 %v1306_v11, %v1306_v11  ;;  %v211_v14 = vadd.f32 %v1306_v11, %v1304_v10 }
  0xde   :  { %v266_v16 = vadd.f32 %v244_v13, %v243_v12 }
  0xe0   :  { %249 = vadd.xlane.f32.xlu2 %v248_v15  ;;  %267 = vadd.xlane.f32.xlu1 %v266_v16 }
  0xe1   :  { %212 = vadd.xlane.f32.xlu0 %v211_v14 }
  0xe8   :  { %191 = vadd.xlane.f32.xlu1 %v190_v19 }
  0xe9   :  { %252 = vadd.xlane.f32.xlu0 %v251_v20 }
  0xf1   :  { %246 = vadd.xlane.f32.xlu0 %v245_v23 }
 0x121   :  { %v195_v30 = vpop.xlane.xlu2 %194 }
 0x122   :  { %v1356_v21 = vmul.f32 %v1324_v32, %v195_v30 }
 0x124   :  { %v278_v30 = vmul.f32 %v1356_v21, %v1356_v21 }
 0x129   :  { %v1332_v39 = vpop.xlane.xlu0 %197 }
 0x131   :  { %v201_v31 = vpop.xlane.xlu1 %200 }
 0x132   :  { %v1327_v33 = vmul.f32 %v1324_v32, %v201_v31 }
 0x134   :  { %v280_v37 = vmul.f32 %v1327_v33, %v1327_v33 }
 0x139   :  { %v256_v35 = vpop.xlane.xlu1 %255  ;;  %v204_v36 = vpop.xlane.xlu2 %203 }
 0x13a   :  { %v272_v38 = vmul.f32 %v256_v35, %v1324_v32  ;;  %v1335_v50 = vmul.f32 %v1324_v32, %v204_v36 }
 0x13c   :  { %v288_v44 = vsub.f32 %v272_v38, %v280_v37  ;;  %v281_v56 = vmul.f32 %v1335_v50, %v1335_v50 }
 0x13e   :  { %v296_v47 = vmax.f32 %v288_v44, 0.0 }
 0x140   :  { %v304_v51 = vadd.f32 1e-05, %v296_v47 }
 0x141   :  { %v259_v52 = vpop.xlane.xlu2 %258  ;;  %v207_v55 = vpop.xlane.xlu1 %206 }
 0x142   :  { %1061 = vrsqrt.f32 %v304_v51  ;;  %v273_v57 = vmul.f32 %v259_v52, %v1324_v32  ;;  %v1341_v58 = vmul.f32 %v1324_v32, %v207_v55  ;;  %vm345_vm2 = vweird.f32 %v304_v51 }
 0x143   :  { %v262_v61 = vpop.xlane.xlu0 %261 }
 0x144   :  { %v289_v62 = vsub.f32 %v273_v57, %v281_v56  ;;  %v282_v63 = vmul.f32 %v1341_v58, %v1341_v58  ;;  %v274_v0 = vmul.f32 %v262_v61, %v1324_v32 }
 0x146   :  { %v297_v1 = vmax.f32 %v289_v62, 0.0  ;;  %v290_v4 = vsub.f32 %v274_v0, %v282_v63  ;;  %v1379_v63 = vmul.f32 %v1324_v32, %v1332_v39 }
 0x148   :  { %v1062_v5 = vpop.eup %1061  ;;  %v305_v6 = vadd.f32 1e-05, %v297_v1  ;;  %v298_v7 = vmax.f32 %v290_v4, 0.0 }
 0x149   :  { %v340_v8 = vmul.f32 %v1062_v5, %v304_v51  ;;  %vm346_vm1 = vweird.f32 %v1062_v5 }
 0x14a   :  { %1063 = vrsqrt.f32 %v305_v6  ;;  %v1346_v9 = vadd.f32 1e-05, %v298_v7  ;;  %vm347_vm3 = vmor %vm345_vm2, %vm346_vm1  ;;  %vm355_vm5 = vweird.f32 %v305_v6 }
 0x14b   :  { %v341_v12 = vmul.f32 %v1062_v5, %v340_v8  ;;  %v265_v13 = vpop.xlane.xlu2 %264  ;;  %v210_v14 = vpop.xlane.xlu0 %209 }
 0x14c   :  { %1065 = vrsqrt.f32 %v1346_v9  ;;  %v275_v15 = vmul.f32 %v265_v13, %v1324_v32  ;;  %v1351_v16 = vmul.f32 %v1324_v32, %v210_v14  ;;  %vm365_vm8 = vweird.f32 %v1346_v9 }
 0x14d   :  { %v342_v17 = vmul.f32 0.5, %v341_v12 }
 0x14e   :  { %v283_v18 = vmul.f32 %v1351_v16, %v1351_v16 }
 0x14f   :  { %v343_v19 = vsub.f32 1.5, %v342_v17 }
 0x150   :  { %v1064_v20 = vpop.eup %1063  ;;  %v291_v22 = vsub.f32 %v275_v15, %v283_v18 }
 0x151   :  { %v350_v23 = vmul.f32 %v1064_v20, %v305_v6  ;;  %v344_v25 = vmul.f32 %v1062_v5, %v343_v19  ;;  %vm356_vm4 = vweird.f32 %v1064_v20  ;;  %v279_v6 = vmul.f32 %v1379_v63, %v1379_v63 }
 0x152   :  { %v1066_v26 = vpop.eup %1065  ;;  %v299_v27 = vmax.f32 %v291_v22, 0.0  ;;  %vm357_vm6 = vmor %vm355_vm5, %vm356_vm4 }
 0x153   :  { %v351_v28 = vmul.f32 %v1064_v20, %v350_v23  ;;  %v360_v29 = vmul.f32 %v1066_v26, %v1346_v9  ;;  %v250_v31 = vpop.xlane.xlu2 %249  ;;  %v348_v34 = vsel %vm347_vm3, %v1062_v5, %v344_v25  ;;  %v268_v37 = vpop.xlane.xlu1 %267  ;;  %v178_v5 = vld [vmem:[%s1647_s2 + $0x20] sm:$0xff]  ;;  %vm366_vm7 = vweird.f32 %v1066_v26  ;;  %v179_v9 = vld [vmem:[%s1647_s2 + $0x28] sm:$0xff] }
 0x154   :  { %v1364_v35 = vadd.f32 1e-05, %v299_v27  ;;  %v270_v36 = vmul.f32 %v250_v31, %v1324_v32  ;;  %v213_v38 = vpop.xlane.xlu0 %212  ;;  %v1367_v44 = vmul.f32 %v348_v34, %v177_v24  ;;  %v276_v52 = vmul.f32 %v268_v37, %v1324_v32  ;;  %vm367_vm9 = vmor %vm365_vm8, %vm366_vm7 }
 0x155   :  { %v352_v47 = vmul.f32 0.5, %v351_v28  ;;  %v361_v51 = vmul.f32 %v1066_v26, %v360_v29  ;;  %v1371_v55 = vmul.f32 %v1324_v32, %v213_v38 }
 0x156   :  { %1067 = vrsqrt.f32 %v1364_v35  ;;  %v286_v56 = vsub.f32 %v270_v36, %v278_v30  ;;  %430 = vperm.xlu2 %1057, %v1367_v44   ;;  %vm375_vm11 = vweird.f32 %v1364_v35 }
 0x157   :  { %v353_v57 = vsub.f32 1.5, %v352_v47  ;;  %v362_v61 = vmul.f32 0.5, %v361_v51  ;;  %v284_v62 = vmul.f32 %v1371_v55, %v1371_v55  ;;  %v180_v51 = vld [vmem:[%s1647_s2 + $0x30] sm:$0xff] }
 0x158   :  { %v294_v0 = vmax.f32 %v286_v56, 0.0  ;;  %v187_v56 = vld [vmem:[%s1648_s3 + $0x28] sm:$0xff] }
 0x159   :  { %v363_v1 = vsub.f32 1.5, %v362_v61  ;;  %v292_v4 = vsub.f32 %v276_v52, %v284_v62  ;;  %v354_v7 = vmul.f32 %v1064_v20, %v353_v57 }
 0x15a   :  { %v1385_v15 = vadd.f32 1e-05, %v294_v0 }
 0x15b   :  { %v300_v8 = vmax.f32 %v292_v4, 0.0  ;;  %v358_v12 = vsel %vm357_vm6, %v1064_v20, %v354_v7  ;;  %v364_v13 = vmul.f32 %v1066_v26, %v363_v1  ;;  %v186_v20 = vld [vmem:[%s1648_s3 + $0x20] sm:$0xff]  ;;  %v192_v27 = vpop.xlane.xlu1 %191 }
 0x15c   :  { %v1068_v14 = vpop.eup %1067  ;;  %v253_v39 = vpop.xlane.xlu0 %252  ;;  %v393_v17 = vmul.f32 %v358_v12, %v178_v5  ;;  %v1404_v36 = vmul.f32 %v1324_v32, %v192_v27  ;;  %v185_v27 = vld [vmem:[%s1648_s3 + $0x18] sm:$0xff]  ;;  %vm325_vm4 = vweird.f32 %v1385_v15 }
 0x15d   :  { %v370_v18 = vmul.f32 %v1068_v14, %v1364_v35  ;;  %v1390_v19 = vadd.f32 1e-05, %v300_v8  ;;  %v271_v22 = vmul.f32 %v253_v39, %v1324_v32  ;;  %v368_v24 = vsel %vm367_vm9, %v1066_v26, %v364_v13 }
 0x15e   :  { %435 = vperm.xlu2 %1057, %v393_v17   ;;  %v401_v23 = vmul.f32 %v393_v17, %v1335_v50  ;;  %v394_v31 = vmul.f32 %v368_v24, %v179_v9  ;;  %vm376_vm10 = vweird.f32 %v1068_v14  ;;  %v400_v9 = vmul.f32 %v1367_v44, %v1327_v33  ;;  %v181_v33 = vld [vmem:[%s1647_s2 + $0x38] sm:$0xff] }
 0x15f   :  { %v371_v25 = vmul.f32 %v1068_v14, %v370_v18  ;;  %1069 = vrsqrt.f32 %v1390_v19  ;;  %v287_v28 = vsub.f32 %v271_v22, %v279_v6  ;;  %vm377_vm12 = vmor %vm375_vm11, %vm376_vm10  ;;  %vm385_vm14 = vweird.f32 %v1390_v19 }
 0x160   :  { %1071 = vrsqrt.f32 %v1385_v15  ;;  %v409_v29 = vsub.f32 %v186_v20, %v401_v23  ;;  %v402_v26 = vmul.f32 %v394_v31, %v1341_v58  ;;  %v277_v58 = vmul.f32 %v1404_v36, %v1404_v36 }
 0x161   :  { %v372_v34 = vmul.f32 0.5, %v371_v25  ;;  %v295_v30 = vmax.f32 %v287_v28, 0.0  ;;  %vm561_vm9 = vcmask 523264  }
 0x162   :  { %491 = vperm.xlu1 %1058, %v409_v29   ;;  %v410_v5 = vsub.f32 %v187_v56, %v402_v26 }
 0x163   :  { %v373_v37 = vsub.f32 1.5, %v372_v34  ;;  %v303_v38 = vadd.f32 1e-05, %v295_v30  ;;  %v176_v34 = vld [vmem:[%s1647_s2 + $0x10] sm:$0xff] }
 0x164   :  { %v247_v50 = vpop.xlane.xlu0 %246 }
 0x165   :  { %v1070_v47 = vpop.eup %1069  ;;  %v374_v52 = vmul.f32 %v1068_v14, %v373_v37  ;;  %1073 = vrsqrt.f32 %v303_v38  ;;  %v269_v62 = vmul.f32 %v247_v50, %v1324_v32  ;;  %vm335_vm1 = vweird.f32 %v303_v38 }
 0x166   :  { %v1414_v57 = vpop.eup %1071  ;;  %v380_v61 = vmul.f32 %v1070_v47, %v1390_v19  ;;  %440 = vperm.xlu2 %1057, %v394_v31   ;;  %vm386_vm13 = vweird.f32 %v1070_v47  ;;  %v408_v31 = vsub.f32 %v185_v27, %v400_v9 }
 0x167   :  { %v378_v0 = vsel %vm377_vm12, %v1068_v14, %v374_v52  ;;  %v285_v35 = vsub.f32 %v269_v62, %v277_v58  ;;  %v320_v7 = vmul.f32 %v1414_v57, %v1385_v15  ;;  %v188_v14 = vld [vmem:[%s1648_s3 + $0x30] sm:$0xff]  ;;  %vm387_vm0 = vmor %vm385_vm14, %vm386_vm13  ;;  %vm326_vm3 = vweird.f32 %v1414_v57  ;;  %v189_v58 = vld [vmem:[%s1648_s3 + $0x38] sm:$0xff] }
 0x168   :  { %v395_v1 = vmul.f32 %v378_v0, %v180_v51  ;;  %v381_v4 = vmul.f32 %v1070_v47, %v380_v61  ;;  %vm327_vm6 = vmor %vm325_vm4, %vm326_vm3  ;;  %v174_v62 = vld [vmem:[%s1647_s2] sm:$0xff] }
 0x169   :  { %v293_v12 = vmax.f32 %v285_v35, 0.0  ;;  %v321_v22 = vmul.f32 %v1414_v57, %v320_v7 }
 0x16a   :  { %v382_v8 = vmul.f32 0.5, %v381_v4  ;;  %496 = vperm.xlu1 %1058, %v410_v5   ;;  %v403_v39 = vmul.f32 %v395_v1, %v1351_v16 }
 0x16b   :  { %v1074_v13 = vpop.eup %1073  ;;  %v301_v18 = vadd.f32 1e-05, %v293_v12  ;;  %v322_v16 = vmul.f32 0.5, %v321_v22 }
 0x16c   :  { %v383_v17 = vsub.f32 1.5, %v382_v8  ;;  %v330_v6 = vmul.f32 %v1074_v13, %v303_v38  ;;  %v411_v25 = vsub.f32 %v188_v14, %v403_v39  ;;  %vm336_vm15 = vweird.f32 %v1074_v13  ;;  %v184_v8 = vld [vmem:[%s1648_s3 + $0x10] sm:$0xff] }
 0x16d   :  { %1075 = vrsqrt.f32 %v301_v18  ;;  %v323_v37 = vsub.f32 1.5, %v322_v16  ;;  %vm337_vm2 = vmor %vm335_vm1, %vm336_vm15  ;;  %vm315_vm7 = vweird.f32 %v301_v18 }
 0x16e   :  { %v331_v20 = vmul.f32 %v1074_v13, %v330_v6  ;;  %445 = vperm.xlu2 %1057, %v395_v1   ;;  %v384_v23 = vmul.f32 %v1070_v47, %v383_v17  ;;  %v175_v1 = vld [vmem:[%s1647_s2 + $0x8] sm:$0xff] }
 0x16f   :  { %v324_v61 = vmul.f32 %v1414_v57, %v323_v37 }
 0x170   :  { %v332_v24 = vmul.f32 0.5, %v331_v20  ;;  %v388_v44 = vsel %vm387_vm0, %v1070_v47, %v384_v23 }
 0x171   :  { %v396_v26 = vmul.f32 %v388_v44, %v181_v33  ;;  %v328_v15 = vsel %vm327_vm6, %v1414_v57, %v324_v61  ;;  %v183_v57 = vld [vmem:[%s1648_s3 + $0x8] sm:$0xff]  ;;  %vm822_vm6 = vcmask 261120  }
 0x172   :  { %v333_v28 = vsub.f32 1.5, %v332_v24  ;;  %501 = vperm.xlu1 %1058, %v411_v25   ;;  %v390_v5 = vmul.f32 %v328_v15, %v175_v1 }
 0x173   :  { %v1076_v29 = vpop.eup %1075  ;;  %v404_v38 = vmul.f32 %v396_v26, %v1371_v55 }
 0x174   :  { %v334_v30 = vmul.f32 %v1074_v13, %v333_v28  ;;  %v310_v50 = vmul.f32 %v1076_v29, %v301_v18  ;;  %vm316_vm5 = vweird.f32 %v1076_v29  ;;  %v398_v12 = vmul.f32 %v390_v5, %v1356_v21 }
 0x175   :  { %vm317_vm8 = vmor %vm315_vm7, %vm316_vm5  ;;  %v412_v55 = vsub.f32 %v189_v58, %v404_v38 }
 0x176   :  { %486 = vperm.xlu2 %1057, %v408_v31   ;;  %v338_v19 = vsel %vm337_vm2, %v1074_v13, %v334_v30  ;;  %v311_v51 = vmul.f32 %v1076_v29, %v310_v50  ;;  %v406_v39 = vsub.f32 %v183_v57, %v398_v12 }
 0x177   :  { %v391_v52 = vmul.f32 %v338_v19, %v176_v34 }
 0x178   :  { %v312_v56 = vmul.f32 0.5, %v311_v51 }
 0x179   :  { %425 = vperm.xlu0 %1056, %v391_v52   ;;  %v399_v7 = vmul.f32 %v391_v52, %v1379_v63  ;;  %v182_v63 = vld [vmem:[%s1648_s3] sm:$0xff] }
 0x17a   :  { %450 = vperm.xlu1 %1058, %v396_v26   ;;  %v313_v47 = vsub.f32 1.5, %v312_v56 }
 0x17b   :  { %v407_v13 = vsub.f32 %v184_v8, %v399_v7 }
 0x17c   :  { %v314_v0 = vmul.f32 %v1076_v29, %v313_v47 }
 0x17e   :  { %v318_v4 = vsel %vm317_vm8, %v1076_v29, %v314_v0 }
 0x17f   :  { %v389_v35 = vmul.f32 %v318_v4, %v174_v62 }
 0x181   :  { %506 = vperm.xlu0 %1056, %v412_v55   ;;  %415 = vperm.xlu2 %1057, %v389_v35   ;;  %v397_v17 = vmul.f32 %v389_v35, %v1404_v36 }
 0x182   :  { %420 = vperm.xlu1 %1058, %v390_v5  }
 0x183   :  { %v405_v6 = vsub.f32 %v182_v63, %v397_v17 }
 0x189   :  { %481 = vperm.xlu0 %1056, %v407_v13  }
 0x18a   :  { %476 = vperm.xlu1 %1058, %v406_v39  }
 0x191   :  { %471 = vperm.xlu0 %1056, %v405_v6  }
 0x1b0   :  { %v431_v18 = vpop.permute.xlu2 %430 }
 0x1b8   :  { %v436_v14 = vpop.permute.xlu2 %435 }
 0x1b9   :  { %v461_v34 = vmul.f32 %v436_v14, %v1270_v53  ;;  %v462_v50 = vmul.f32 %v436_v14, %v1272_v54 }
 0x1c0   :  { %v441_v20 = vpop.permute.xlu2 %440 }
 0x1c1   :  { %v463_v36 = vmul.f32 %v441_v20, %v1280_v59  ;;  %v464_v29 = vmul.f32 %v441_v20, %v1282_v60  ;;  %v459_v59 = vmul.f32 %v431_v18, %v1260_v48  ;;  %v460_v60 = vmul.f32 %v431_v18, %v1262_v49 }
 0x1c8   :  { %v446_v23 = vpop.permute.xlu2 %445 }
 0x1c9   :  { %v465_v16 = vmul.f32 %v446_v23, %v1290_v2  ;;  %v466_v27 = vmul.f32 %v446_v23, %v1292_v3 }
 0x1d0   :  { %v487_v19 = vpop.permute.xlu2 %486 }
 0x1d1   :  { %v515_v53 = vadd.f32 %v487_v19, %v459_v59  ;;  %v516_v58 = vadd.f32 %v487_v19, %v460_v60 }
 0x1d3   :  { %v531_v12 = vmul.f32 0.2, %v515_v53 }
 0x1d4   :  { %v492_v22 = vpop.permute.xlu1 %491 }
 0x1d5   :  { %v517_v52 = vadd.f32 %v492_v22, %v461_v34 }
 0x1d7   :  { %v533_v15 = vmul.f32 0.2, %v517_v52 }
 0x1d9   :  { %v549_v18 = vmax.f32 %v517_v52, %v533_v15 }
 0x1db   :  { %v416_v6 = vpop.permute.xlu2 %415 }
 0x1dc   :  { %v497_v21 = vpop.permute.xlu1 %496  ;;  %v453_v23 = vmul.f32 %v416_v6, %v1244_v40  ;;  %v557_v40 = vld [vmem:[%s1649_s4] sm:$0xff] }
 0x1dd   :  { %v519_v30 = vadd.f32 %v497_v21, %v463_v36  ;;  %v520_v2 = vadd.f32 %v497_v21, %v464_v29  ;;  %v547_v21 = vmax.f32 %v515_v53, %v531_v12 }
 0x1df   :  { %v535_v47 = vmul.f32 0.2, %v519_v30  ;;  %v536_v0 = vmul.f32 0.2, %v520_v2 }
 0x1e1   :  { %v551_v8 = vmax.f32 %v519_v30, %v535_v47  ;;  %v552_v17 = vmax.f32 %v520_v2, %v536_v0 }
 0x1e4   :  { %v502_v9 = vpop.permute.xlu1 %501 }
 0x1e5   :  { %v521_v28 = vadd.f32 %v502_v9, %v465_v16  ;;  %v522_v33 = vadd.f32 %v502_v9, %v466_v27 }
 0x1e7   :  { %v537_v56 = vmul.f32 0.2, %v521_v28  ;;  %v538_v38 = vmul.f32 0.2, %v522_v33 }
 0x1e9   :  { %v553_v1 = vmax.f32 %v521_v28, %v537_v56  ;;  %v554_v49 = vmax.f32 %v522_v33, %v538_v38 }
 0x1eb   :  { %v426_v24 = vpop.permute.xlu0 %425 }
 0x1ec   :  { %v451_v25 = vpop.permute.xlu1 %450  ;;  %v457_v55 = vmul.f32 %v426_v24, %v1254_v45  ;;  %v458_v48 = vmul.f32 %v426_v24, %v1256_v46  ;;  %v532_v45 = vmul.f32 0.2, %v516_v58  ;;  %v454_v24 = vmul.f32 %v416_v6, %v1246_v41  ;;  %v558_v41 = vld [vmem:[%s1649_s4 + $0x8] sm:$0xff] }
 0x1ed   :  { %v467_v44 = vmul.f32 %v451_v25, %v1304_v10  ;;  %v468_v31 = vmul.f32 %v451_v25, %v1306_v11  ;;  %v518_v10 = vadd.f32 %v492_v22, %v462_v50  ;;  %v560_v50 = vld [vmem:[%s1649_s4 + $0x18] sm:$0xff] }
 0x1ee   :  { %v548_v20 = vmax.f32 %v516_v58, %v532_v45 }
 0x1ef   :  { %v534_v4 = vmul.f32 0.2, %v518_v10 }
 0x1f1   :  { %v550_v22 = vmax.f32 %v518_v10, %v534_v4 }
 0x1f3   :  { %v507_v37 = vpop.permute.xlu0 %506 }
 0x1f4   :  { %v523_v26 = vadd.f32 %v507_v37, %v467_v44  ;;  %v524_v3 = vadd.f32 %v507_v37, %v468_v31  ;;  %v421_v51 = vpop.permute.xlu1 %420  ;;  %v559_v37 = vld [vmem:[%s1649_s4 + $0x10] sm:$0xff] }
 0x1f5   :  { %v455_v35 = vmul.f32 %v421_v51, %v1248_v42  ;;  %v456_v5 = vmul.f32 %v421_v51, %v1250_v43 }
 0x1f6   :  { %v539_v61 = vmul.f32 0.2, %v523_v26  ;;  %v540_v11 = vmul.f32 0.2, %v524_v3 }
 0x1f8   :  { %v555_v62 = vmax.f32 %v523_v26, %v539_v61  ;;  %v556_v54 = vmax.f32 %v524_v3, %v540_v11 }
 0x1fa   :  { %582 = vmatpush.msra.mxu2 %v555_v62  ;;  %611 = vmatpush.msra.mxu3 %v556_v54 }
 0x1fb   :  { %v482_v7 = vpop.permute.xlu0 %481 }
 0x1fc   :  { %v513_v57 = vadd.f32 %v482_v7, %v457_v55  ;;  %v514_v13 = vadd.f32 %v482_v7, %v458_v48  ;;  %583 = vmatpush.msra.mxu2 %v553_v1  ;;  %612 = vmatpush.msra.mxu3 %v554_v49  ;;  %v477_v39 = vpop.permute.xlu1 %476 }
 0x1fd   :  { %v511_v63 = vadd.f32 %v477_v39, %v455_v35  ;;  %v512_v46 = vadd.f32 %v477_v39, %v456_v5 }
 0x1fe   :  { %584 = vmatpush.msra.mxu2 %v551_v8  ;;  %613 = vmatpush.msra.mxu3 %v552_v17  ;;  %v529_v42 = vmul.f32 0.2, %v513_v57  ;;  %v530_v14 = vmul.f32 0.2, %v514_v13 }
 0x1ff   :  { %v527_v43 = vmul.f32 0.2, %v511_v63  ;;  %v528_v9 = vmul.f32 0.2, %v512_v46 }
 0x200   :  { %585 = vmatpush.msra.mxu2 %v549_v18  ;;  %614 = vmatpush.msra.mxu3 %v550_v22  ;;  %v545_v25 = vmax.f32 %v513_v57, %v529_v42  ;;  %v546_v16 = vmax.f32 %v514_v13, %v530_v14 }
 0x201   :  { %v543_v36 = vmax.f32 %v511_v63, %v527_v43  ;;  %v544_v33 = vmax.f32 %v512_v46, %v528_v9 }
 0x202   :  { %586 = vmatpush.msra.mxu2 %v547_v21  ;;  %615 = vmatpush.msra.mxu3 %v548_v20 }
 0x203   :  { %v472_v27 = vpop.permute.xlu0 %471 }
 0x204   :  { %v509_v28 = vadd.f32 %v472_v27, %v453_v23  ;;  %v510_v29 = vadd.f32 %v472_v27, %v454_v24  ;;  %587 = vmatpush.msra.mxu2 %v545_v25  ;;  %616 = vmatpush.msra.mxu3 %v546_v16 }
 0x206   :  { %588 = vmatpush.msra.mxu2 %v543_v36  ;;  %617 = vmatpush.msra.mxu3 %v544_v33  ;;  %v525_v44 = vmul.f32 0.2, %v509_v28  ;;  %v526_v31 = vmul.f32 0.2, %v510_v29 }
 0x208   :  { %v541_v34 = vmax.f32 %v509_v28, %v525_v44  ;;  %v542_v30 = vmax.f32 %v510_v29, %v526_v31 }
 0x20a   :  { %589 = vmatpush.msra.mxu2 %v541_v34  ;;  %618 = vmatpush.msra.mxu3 %v542_v30 }
 0x20b   :  { %1038 = vmatmul.msk.f32.vlgmr.msra.gmra.mxu2 %vm561_vm9, %v557_v40  ;;  %1042 = vmatmul.msk.f32.vlgmr.msra.gmra.mxu3 %vm561_vm9, %v557_v40 }
 0x213   :  { %1039 = vmatmul.msk.f32.gmra.mxu2 %vm561_vm9, %v558_v41  ;;  %1043 = vmatmul.msk.f32.gmra.mxu3 %vm561_vm9, %v558_v41 }
 0x21b   :  { %1040 = vmatmul.msk.f32.gmra.mxu2 %vm561_vm9, %v559_v37  ;;  %1044 = vmatmul.msk.f32.gmra.mxu3 %vm561_vm9, %v559_v37 }
 0x223   :  { %1041 = vmatmul.msk.f32.gmra.mxu2 %vm561_vm9, %v560_v50  ;;  %1045 = vmatmul.msk.f32.gmra.mxu3 %vm561_vm9, %v560_v50 }
 0x28e   :  { %v1493_v19 = vpop.f32.mrf.mxu2  ;;  %v1495_v2 = vpop.f32.mrf.mxu3 }
 0x28f   :  { %v656_v54 = vmul.f32 %v1493_v19, %v1493_v19  ;;  %v657_v0 = vmul.f32 %v1495_v2, %v1495_v2  ;;  %v640_v48 = vadd.f32 %v1495_v2, %v1493_v19 }
 0x291   :  { %v664_v55 = vadd.f32 %v657_v0, %v656_v54  ;;  %v635_v0 = vld [vmem:[%s1650_s5 + $0x18] sm:$0xff] }
 0x296   :  { %v1497_v26 = vpop.f32.mrf.mxu2  ;;  %v1499_v3 = vpop.f32.mrf.mxu3 }
 0x297   :  { %v643_v51 = vadd.f32 %v1499_v3, %v1497_v26  ;;  %v658_v1 = vmul.f32 %v1497_v26, %v1497_v26  ;;  %v659_v15 = vmul.f32 %v1499_v3, %v1499_v3 }
 0x299   :  { %644 = vadd.xlane.f32.xlu2 %v643_v51  ;;  %v667_v49 = vadd.f32 %v659_v15, %v658_v1 }
 0x29e   :  { %v1503_v59 = vpop.f32.mrf.mxu2  ;;  %v1505_v60 = vpop.f32.mrf.mxu3 }
 0x29f   :  { %v646_v52 = vadd.f32 %v1505_v60, %v1503_v59  ;;  %v660_v56 = vmul.f32 %v1503_v59, %v1503_v59  ;;  %v661_v10 = vmul.f32 %v1505_v60, %v1505_v60 }
 0x2a1   :  { %647 = vadd.xlane.f32.xlu1 %v646_v52  ;;  %v670_v38 = vadd.f32 %v661_v10, %v660_v56 }
 0x2a6   :  { %v1513_v61 = vpop.f32.mrf.mxu2  ;;  %v1515_v11 = vpop.f32.mrf.mxu3 }
 0x2a7   :  { %v649_v53 = vadd.f32 %v1515_v11, %v1513_v61  ;;  %v662_v47 = vmul.f32 %v1513_v61, %v1513_v61  ;;  %v663_v58 = vmul.f32 %v1515_v11, %v1515_v11 }
 0x2a9   :  { %671 = vadd.xlane.f32.xlu1 %v670_v38  ;;  %650 = vadd.xlane.f32.xlu2 %v649_v53  ;;  %v673_v62 = vadd.f32 %v663_v58, %v662_v47  ;;  %v634_v38 = vld [vmem:[%s1650_s5 + $0x10] sm:$0xff] }
 0x2ab   :  { %674 = vadd.xlane.f32.xlu0 %v673_v62 }
 0x2b1   :  { %665 = vadd.xlane.f32.xlu1 %v664_v55  ;;  %641 = vadd.xlane.f32.xlu2 %v640_v48  ;;  %v638_v48 = vld [vmem:[%s1651_s6 + $0x10] sm:$0xff] }
 0x2b3   :  { %668 = vadd.xlane.f32.xlu0 %v667_v49 }
 0x30c   :  { %v645_v4 = vpop.xlane.xlu2 %644 }
 0x30d   :  { %v1546_v18 = vmul.f32 %v645_v4, %v1324_v32 }
 0x30f   :  { %v681_v23 = vmul.f32 %v1546_v18, %v1546_v18 }
 0x314   :  { %v648_v35 = vpop.xlane.xlu1 %647 }
 0x315   :  { %v1534_v5 = vmul.f32 %v648_v35, %v1324_v32 }
 0x317   :  { %v682_v12 = vmul.f32 %v1534_v5, %v1534_v5 }
 0x31c   :  { %v672_v7 = vpop.xlane.xlu1 %671  ;;  %v651_v8 = vpop.xlane.xlu2 %650 }
 0x31d   :  { %v678_v57 = vmul.f32 %v672_v7, %v1324_v32  ;;  %v1540_v13 = vmul.f32 %v651_v8, %v1324_v32 }
 0x31e   :  { %v675_v39 = vpop.xlane.xlu0 %674 }
 0x31f   :  { %v686_v17 = vsub.f32 %v678_v57, %v682_v12  ;;  %v683_v45 = vmul.f32 %v1540_v13, %v1540_v13  ;;  %v679_v63 = vmul.f32 %v675_v39, %v1324_v32  ;;  %v639_v12 = vld [vmem:[%s1651_s6 + $0x18] sm:$0xff] }
 0x321   :  { %v690_v46 = vmax.f32 %v686_v17, 0.0  ;;  %v687_v6 = vsub.f32 %v679_v63, %v683_v45 }
 0x323   :  { %v694_v22 = vadd.f32 1e-05, %v690_v46  ;;  %v691_v42 = vmax.f32 %v687_v6, 0.0 }
 0x324   :  { %v642_v14 = vpop.xlane.xlu2 %641  ;;  %v666_v21 = vpop.xlane.xlu1 %665 }
 0x325   :  { %1077 = vrsqrt.f32 %v694_v22  ;;  %v695_v43 = vadd.f32 1e-05, %v691_v42  ;;  %v1549_v20 = vmul.f32 %v642_v14, %v1324_v32  ;;  %v676_v25 = vmul.f32 %v666_v21, %v1324_v32 }
 0x326   :  { %v669_v9 = vpop.xlane.xlu0 %668  ;;  %vm722_vm11 = vweird.f32 %v694_v22 }
 0x327   :  { %1079 = vrsqrt.f32 %v695_v43  ;;  %v677_v24 = vmul.f32 %v669_v9, %v1324_v32  ;;  %v680_v16 = vmul.f32 %v1549_v20, %v1549_v20  ;;  %vm732_vm14 = vweird.f32 %v695_v43 }
 0x329   :  { %v685_v27 = vsub.f32 %v677_v24, %v681_v23  ;;  %v684_v36 = vsub.f32 %v676_v25, %v680_v16  ;;  %v636_v23 = vld [vmem:[%s1651_s6] sm:$0xff]  ;;  %v637_v16 = vld [vmem:[%s1651_s6 + $0x8] sm:$0xff] }
 0x32b   :  { %v1078_v28 = vpop.eup %1077  ;;  %v689_v29 = vmax.f32 %v685_v27, 0.0  ;;  %v688_v44 = vmax.f32 %v684_v36, 0.0 }
 0x32c   :  { %v717_v33 = vmul.f32 %v1078_v28, %v694_v22  ;;  %vm723_vm10 = vweird.f32 %v1078_v28 }
 0x32d   :  { %v1080_v31 = vpop.eup %1079  ;;  %v693_v34 = vadd.f32 1e-05, %v689_v29  ;;  %v692_v41 = vadd.f32 1e-05, %v688_v44  ;;  %vm724_vm13 = vmor %vm722_vm11, %vm723_vm10 }
 0x32e   :  { %v718_v30 = vmul.f32 %v1078_v28, %v717_v33  ;;  %v727_v40 = vmul.f32 %v1080_v31, %v695_v43  ;;  %vm733_vm12 = vweird.f32 %v1080_v31 }
 0x32f   :  { %1081 = vrsqrt.f32 %v693_v34  ;;  %vm734_vm15 = vmor %vm732_vm14, %vm733_vm12  ;;  %vm712_vm2 = vweird.f32 %v693_v34  ;;  %vm702_vm3 = vweird.f32 %v692_v41 }
 0x330   :  { %v719_v37 = vmul.f32 0.5, %v718_v30  ;;  %v728_v50 = vmul.f32 %v1080_v31, %v727_v40  ;;  %1083 = vrsqrt.f32 %v692_v41 }
 0x332   :  { %v720_v51 = vsub.f32 1.5, %v719_v37  ;;  %v729_v52 = vmul.f32 0.5, %v728_v50 }
 0x334   :  { %v721_v56 = vmul.f32 %v1078_v28, %v720_v51  ;;  %v730_v10 = vsub.f32 1.5, %v729_v52 }
 0x335   :  { %v1082_v53 = vpop.eup %1081 }
 0x336   :  { %v1084_v47 = vpop.eup %1083  ;;  %v731_v58 = vmul.f32 %v1080_v31, %v730_v10  ;;  %v707_v62 = vmul.f32 %v1082_v53, %v693_v34  ;;  %v725_v54 = vsel %vm724_vm13, %v1078_v28, %v721_v56  ;;  %vm713_vm0 = vweird.f32 %v1082_v53 }
 0x337   :  { %v697_v1 = vmul.f32 %v1084_v47, %v692_v41  ;;  %v738_v15 = vmul.f32 %v725_v54, %v634_v38  ;;  %vm703_vm1 = vweird.f32 %v1084_v47  ;;  %vm714_vm4 = vmor %vm712_vm2, %vm713_vm0 }
 0x338   :  { %v708_v55 = vmul.f32 %v1082_v53, %v707_v62  ;;  %v735_v49 = vsel %vm734_vm15, %v1080_v31, %v731_v58  ;;  %vm704_vm5 = vmor %vm702_vm3, %vm703_vm1 }
 0x339   :  { %v698_v4 = vmul.f32 %v1084_v47, %v697_v1  ;;  %v742_v35 = vmul.f32 %v738_v15, %v1534_v5  ;;  %v739_v7 = vmul.f32 %v735_v49, %v635_v0  ;;  %v633_v5 = vld [vmem:[%s1650_s5 + $0x8] sm:$0xff] }
 0x33a   :  { %v709_v8 = vmul.f32 0.5, %v708_v55 }
 0x33b   :  { %v699_v57 = vmul.f32 0.5, %v698_v4  ;;  %v746_v39 = vsub.f32 %v638_v48, %v742_v35  ;;  %v743_v17 = vmul.f32 %v739_v7, %v1540_v13  ;;  %v632_v13 = vld [vmem:[%s1650_s5] sm:$0xff] }
 0x33c   :  { %v710_v45 = vsub.f32 1.5, %v709_v8  ;;  %v821_v8 = vld [vmem:[%s1652_s7 + $0x8] sm:$0xff] }
 0x33d   :  { %v700_v63 = vsub.f32 1.5, %v699_v57  ;;  %788 = vperm.xlu2 %1057, %v746_v39   ;;  %v747_v46 = vsub.f32 %v639_v12, %v743_v17 }
 0x33e   :  { %v711_v6 = vmul.f32 %v1082_v53, %v710_v45 }
 0x33f   :  { %v701_v22 = vmul.f32 %v1084_v47, %v700_v63  ;;  %793 = vperm.xlu1 %1058, %v747_v46  }
 0x340   :  { %v715_v42 = vsel %vm714_vm4, %v1082_v53, %v711_v6 }
 0x341   :  { %v705_v14 = vsel %vm704_vm5, %v1084_v47, %v701_v22  ;;  %v737_v43 = vmul.f32 %v715_v42, %v633_v5 }
 0x342   :  { %v736_v21 = vmul.f32 %v705_v14, %v632_v13 }
 0x343   :  { %755 = vperm.xlu0 %1056, %v737_v43   ;;  %v741_v25 = vmul.f32 %v737_v43, %v1546_v18 }
 0x344   :  { %v740_v9 = vmul.f32 %v736_v21, %v1549_v20 }
 0x345   :  { %765 = vperm.xlu2 %1057, %v739_v7   ;;  %v745_v27 = vsub.f32 %v637_v16, %v741_v25 }
 0x346   :  { %v744_v24 = vsub.f32 %v636_v23, %v740_v9 }
 0x347   :  { %750 = vperm.xlu1 %1058, %v736_v21  }
 0x34b   :  { %760 = vperm.xlu0 %1056, %v738_v15  }
 0x34d   :  { %778 = vperm.xlu2 %1057, %v744_v24  }
 0x353   :  { %783 = vperm.xlu0 %1056, %v745_v27  }
 0x397   :  { %v789_v36 = vpop.permute.xlu2 %788 }
 0x39f   :  { %v766_v28 = vpop.permute.xlu2 %765 }
 0x3a0   :  { %v774_v20 = vmul.f32 %v766_v28, %v1513_v61  ;;  %v775_v29 = vmul.f32 %v766_v28, %v1515_v11 }
 0x3a7   :  { %v779_v38 = vpop.permute.xlu2 %778 }
 0x3b1   :  { %v794_v33 = vpop.permute.xlu1 %793 }
 0x3b2   :  { %v802_v44 = vadd.f32 %v794_v33, %v774_v20  ;;  %v803_v31 = vadd.f32 %v794_v33, %v775_v29 }
 0x3b4   :  { %v810_v34 = vmul.f32 0.2, %v802_v44  ;;  %v811_v30 = vmul.f32 0.2, %v803_v31 }
 0x3b5   :  { %v756_v40 = vpop.permute.xlu0 %755 }
 0x3b6   :  { %v818_v41 = vmax.f32 %v802_v44, %v810_v34  ;;  %v819_v18 = vmax.f32 %v803_v31, %v811_v30  ;;  %v770_v58 = vmul.f32 %v756_v40, %v1497_v26  ;;  %v771_v54 = vmul.f32 %v756_v40, %v1499_v3  ;;  %v820_v3 = vld [vmem:[%s1652_s7] sm:$0xff] }
 0x3b8   :  { %841 = vmatpush.msrb.mxu2 %v818_v41  ;;  %864 = vmatpush.msrb.mxu3 %v819_v18 }
 0x3b9   :  { %v751_v37 = vpop.permute.xlu1 %750 }
 0x3ba   :  { %v768_v61 = vmul.f32 %v751_v37, %v1493_v19  ;;  %v769_v11 = vmul.f32 %v751_v37, %v1495_v2 }
 0x3bc   :  { %v796_v62 = vadd.f32 %v779_v38, %v768_v61  ;;  %v797_v15 = vadd.f32 %v779_v38, %v769_v11 }
 0x3bd   :  { %v761_v50 = vpop.permute.xlu0 %760 }
 0x3be   :  { %v772_v51 = vmul.f32 %v761_v50, %v1503_v59  ;;  %v773_v52 = vmul.f32 %v761_v50, %v1505_v60  ;;  %v804_v19 = vmul.f32 0.2, %v796_v62  ;;  %v805_v49 = vmul.f32 0.2, %v797_v15 }
 0x3c0   :  { %v800_v56 = vadd.f32 %v789_v36, %v772_v51  ;;  %v801_v10 = vadd.f32 %v789_v36, %v773_v52  ;;  %v812_v26 = vmax.f32 %v796_v62, %v804_v19  ;;  %v813_v7 = vmax.f32 %v797_v15, %v805_v49  ;;  %v875_v51 = vld [vmem:[%s1653_s8] sm:$0xff] }
 0x3c2   :  { %v808_v53 = vmul.f32 0.2, %v800_v56  ;;  %v809_v47 = vmul.f32 0.2, %v801_v10 }
 0x3c4   :  { %v816_v0 = vmax.f32 %v800_v56, %v808_v53  ;;  %v817_v1 = vmax.f32 %v801_v10, %v809_v47  ;;  %v877_v10 = vld [vmem:[%s1654_s9] sm:$0xff] }
 0x3c5   :  { %v784_v59 = vpop.permute.xlu0 %783 }
 0x3c6   :  { %v798_v55 = vadd.f32 %v784_v59, %v770_v58  ;;  %v799_v60 = vadd.f32 %v784_v59, %v771_v54  ;;  %842 = vmatpush.msrb.mxu2 %v816_v0  ;;  %865 = vmatpush.msrb.mxu3 %v817_v1  ;;  %v876_v58 = vld [vmem:[%s1653_s8 + $0x8] sm:$0xff]  ;;  %s1158_s8 = smov [#allocation5]  }
 0x3c7   :  { %v878_v1 = vld [vmem:[%s1654_s9 + $0x8] sm:$0xff]  ;;  %s1023_s9 = sshll.u32 %s1158_s8, 4  ;;  %s1024_s9 = int_to_ptr.vmem [resolvable:$true] %s1023_s9 }
 0x3c8   :  { %v806_v2 = vmul.f32 0.2, %v798_v55  ;;  %v807_v48 = vmul.f32 0.2, %v799_v60 }
 0x3ca   :  { %v814_v4 = vmax.f32 %v798_v55, %v806_v2  ;;  %v815_v35 = vmax.f32 %v799_v60, %v807_v48 }
 0x3cc   :  { %843 = vmatpush.msrb.mxu2 %v814_v4  ;;  %866 = vmatpush.msrb.mxu3 %v815_v35 }
 0x3ce   :  { %844 = vmatpush.msrb.mxu2 %v812_v26  ;;  %867 = vmatpush.msrb.mxu3 %v813_v7 }
 0x3cf   :  { %1046 = vmatmul.msk.f32.vlgmr.msrb.gmra.mxu2 %vm822_vm6, %v820_v3  ;;  %1048 = vmatmul.msk.f32.vlgmr.msrb.gmra.mxu3 %vm822_vm6, %v820_v3 }
 0x3d7   :  { %1047 = vmatmul.msk.f32.gmra.mxu2 %vm822_vm6, %v821_v8  ;;  %1049 = vmatmul.msk.f32.gmra.mxu3 %vm822_vm6, %v821_v8 }
 0x452   :  { %v1599_v12 = vpop.f32.mrf.mxu2  ;;  %v1601_v57 = vpop.f32.mrf.mxu3 }
 0x453   :  { %v879_v39 = vadd.f32 %v1601_v57, %v1599_v12  ;;  %v887_v17 = vmul.f32 %v1599_v12, %v1599_v12  ;;  %v888_v45 = vmul.f32 %v1601_v57, %v1601_v57 }
 0x455   :  { %880 = vadd.xlane.f32.xlu1 %v879_v39  ;;  %v891_v63 = vadd.f32 %v888_v45, %v887_v17 }
 0x457   :  { %892 = vadd.xlane.f32.xlu2 %v891_v63 }
 0x45a   :  { %v1609_v46 = vpop.f32.mrf.mxu2  ;;  %v1611_v5 = vpop.f32.mrf.mxu3 }
 0x45b   :  { %v889_v6 = vmul.f32 %v1609_v46, %v1609_v46  ;;  %v890_v22 = vmul.f32 %v1611_v5, %v1611_v5  ;;  %v882_v13 = vadd.f32 %v1611_v5, %v1609_v46 }
 0x45d   :  { %883 = vadd.xlane.f32.xlu0 %v882_v13  ;;  %v894_v42 = vadd.f32 %v890_v22, %v889_v6 }
 0x45f   :  { %895 = vadd.xlane.f32.xlu1 %v894_v42 }
 0x4c8   :  { %v881_v14 = vpop.xlane.xlu1 %880 }
 0x4c9   :  { %v885_v43 = vmul.f32 %v881_v14, %v1324_v32 }
 0x4ca   :  { %v893_v21 = vpop.xlane.xlu2 %892 }
 0x4cb   :  { %v899_v9 = vmul.f32 %v885_v43, %v885_v43  ;;  %v897_v23 = vmul.f32 %v893_v21, %v1324_v32 }
 0x4cd   :  { %v901_v24 = vsub.f32 %v897_v23, %v899_v9 }
 0x4cf   :  { %v903_v25 = vmax.f32 %v901_v24, 0.0 }
 0x4d0   :  { %v884_v16 = vpop.xlane.xlu0 %883 }
 0x4d1   :  { %v905_v27 = vadd.f32 1e-05, %v903_v25  ;;  %v886_v36 = vmul.f32 %v884_v16, %v1324_v32 }
 0x4d2   :  { %v896_v28 = vpop.xlane.xlu1 %895 }
 0x4d3   :  { %1085 = vrsqrt.f32 %v905_v27  ;;  %v900_v20 = vmul.f32 %v886_v36, %v886_v36  ;;  %v898_v29 = vmul.f32 %v896_v28, %v1324_v32  ;;  %vm913_vm8 = vweird.f32 %v905_v27 }
 0x4d5   :  { %v902_v33 = vsub.f32 %v898_v29, %v900_v20 }
 0x4d7   :  { %v904_v44 = vmax.f32 %v902_v33, 0.0 }
 0x4d9   :  { %v1086_v31 = vpop.eup %1085  ;;  %v906_v34 = vadd.f32 1e-05, %v904_v44 }
 0x4da   :  { %v908_v30 = vmul.f32 %v1086_v31, %v905_v27  ;;  %vm914_vm7 = vweird.f32 %v1086_v31 }
 0x4db   :  { %1087 = vrsqrt.f32 %v906_v34  ;;  %vm915_vm9 = vmor %vm913_vm8, %vm914_vm7  ;;  %vm923_vm11 = vweird.f32 %v906_v34 }
 0x4dc   :  { %v909_v40 = vmul.f32 %v1086_v31, %v908_v30 }
 0x4de   :  { %v910_v41 = vmul.f32 0.5, %v909_v40 }
 0x4e0   :  { %v911_v18 = vsub.f32 1.5, %v910_v41 }
 0x4e1   :  { %v1088_v37 = vpop.eup %1087 }
 0x4e2   :  { %v918_v50 = vmul.f32 %v1088_v37, %v906_v34  ;;  %v912_v52 = vmul.f32 %v1086_v31, %v911_v18  ;;  %vm924_vm10 = vweird.f32 %v1088_v37 }
 0x4e3   :  { %vm925_vm12 = vmor %vm923_vm11, %vm924_vm10 }
 0x4e4   :  { %v919_v32 = vmul.f32 %v1088_v37, %v918_v50  ;;  %v916_v61 = vsel %vm915_vm9, %v1086_v31, %v912_v52 }
 0x4e5   :  { %v927_v11 = vmul.f32 %v916_v61, %v875_v51 }
 0x4e6   :  { %v920_v56 = vmul.f32 0.5, %v919_v32 }
 0x4e7   :  { %935 = vperm.xlu0 %1056, %v927_v11   ;;  %v929_v38 = vmul.f32 %v927_v11, %v885_v43 }
 0x4e8   :  { %v921_v53 = vsub.f32 1.5, %v920_v56 }
 0x4e9   :  { %v931_v47 = vsub.f32 %v877_v10, %v929_v38 }
 0x4ea   :  { %v922_v62 = vmul.f32 %v1088_v37, %v921_v53 }
 0x4eb   :  { %949 = vperm.xlu1 %1058, %v931_v47  }
 0x4ec   :  { %v926_v54 = vsel %vm925_vm12, %v1088_v37, %v922_v62 }
 0x4ed   :  { %v928_v0 = vmul.f32 %v926_v54, %v876_v58 }
 0x4ef   :  { %940 = vperm.xlu2 %1057, %v928_v0   ;;  %v930_v15 = vmul.f32 %v928_v0, %v886_v36 }
 0x4f1   :  { %v932_v59 = vsub.f32 %v878_v1, %v930_v15 }
 0x4f3   :  { %954 = vperm.xlu0 %1056, %v932_v59  }
 0x549   :  { %v941_v48 = vpop.permute.xlu2 %940 }
 0x54a   :  { %v945_v35 = vmul.f32 %v941_v48, %v1609_v46  ;;  %v946_v26 = vmul.f32 %v941_v48, %v1611_v5 }
 0x559   :  { %v936_v55 = vpop.permute.xlu0 %935 }
 0x55a   :  { %v943_v19 = vmul.f32 %v936_v55, %v1599_v12  ;;  %v944_v2 = vmul.f32 %v936_v55, %v1601_v57 }
 0x55d   :  { %v950_v60 = vpop.permute.xlu1 %949 }
 0x55e   :  { %v957_v49 = vadd.f32 %v950_v60, %v943_v19  ;;  %v958_v4 = vadd.f32 %v950_v60, %v944_v2 }
 0x560   :  { %v961_v3 = vmul.f32 0.2, %v957_v49  ;;  %v962_v8 = vmul.f32 0.2, %v958_v4 }
 0x562   :  { %v965_v6 = vmax.f32 %v957_v49, %v961_v3  ;;  %v966_v22 = vmax.f32 %v958_v4, %v962_v8 }
 0x565   :  { %v955_v7 = vpop.permute.xlu0 %954 }
 0x566   :  { %v959_v39 = vadd.f32 %v955_v7, %v945_v35  ;;  %v960_v17 = vadd.f32 %v955_v7, %v946_v26 }
 0x568   :  { %v963_v45 = vmul.f32 0.2, %v959_v39  ;;  %v964_v63 = vmul.f32 0.2, %v960_v17 }
 0x56a   :  { %v967_v13 = vmax.f32 %v959_v39, %v963_v45  ;;  %v968_v12 = vmax.f32 %v960_v17, %v964_v63 }
 0x56c   :  { %v969_v42 = vmax.f32 %v965_v6, %v967_v13  ;;  %v976_v57 = vmax.f32 %v966_v22, %v968_v12 }
 0x56e   :  { %v970_v14 = vrot.slane %v969_v42, 4  ;;  %v977_v43 = vrot.slane %v976_v57, 4 }
 0x570   :  { %v971_v21 = vmax.f32 %v969_v42, %v970_v14  ;;  %v978_v9 = vmax.f32 %v976_v57, %v977_v43 }
 0x572   :  { %v972_v46 = vrot.slane %v971_v21, 2  ;;  %v979_v23 = vrot.slane %v978_v9, 2 }
 0x574   :  { %v973_v5 = vmax.f32 %v971_v21, %v972_v46  ;;  %v980_v24 = vmax.f32 %v978_v9, %v979_v23 }
 0x576   :  { %v974_v25 = vrot.slane %v973_v5, 1  ;;  %v981_v16 = vrot.slane %v980_v24, 1 }
 0x578   :  { %v975_v27 = vmax.f32 %v973_v5, %v974_v25  ;;  %v982_v36 = vmax.f32 %v980_v24, %v981_v16 }
 0x57a   :  { %v983_v28 = vsub.f32 %v965_v6, %v975_v27  ;;  %v984_v20 = vsub.f32 %v966_v22, %v982_v36  ;;  %v985_v29 = vsub.f32 %v967_v13, %v975_v27  ;;  %v986_v33 = vsub.f32 %v968_v12, %v982_v36 }
 0x57c   :  { %v987_v44 = vmul.f32 1.442695, %v983_v28  ;;  %v989_v31 = vmul.f32 1.442695, %v984_v20  ;;  %v991_v34 = vmul.f32 1.442695, %v985_v29 }
 0x57d   :  { %v993_v30 = vmul.f32 1.442695, %v986_v33 }
 0x57e   :  { %1089 = vpow2.f32 %v987_v44 }
 0x57f   :  { %1091 = vpow2.f32 %v989_v31 }
 0x580   :  { %1093 = vpow2.f32 %v991_v34 }
 0x581   :  { %1095 = vpow2.f32 %v993_v30 }
 0x584   :  { %v1090_v40 = vpop.eup %1089 }
 0x585   :  { %v1092_v41 = vpop.eup %1091 }
 0x586   :  { %v1094_v18 = vpop.eup %1093 }
 0x587   :  { %v1096_v37 = vpop.eup %1095  ;;  %v995_v50 = vadd.f32 %v1094_v18, %v1090_v40 }
 0x588   :  { %v1002_v51 = vadd.f32 %v1096_v37, %v1092_v41 }
 0x589   :  { %v996_v52 = vrot.slane %v995_v50, 4 }
 0x58a   :  { %v1003_v32 = vrot.slane %v1002_v51, 4 }
 0x58b   :  { %v997_v61 = vadd.f32 %v996_v52, %v995_v50 }
 0x58c   :  { %v1004_v11 = vadd.f32 %v1003_v32, %v1002_v51 }
 0x58d   :  { %v998_v56 = vrot.slane %v997_v61, 2 }
 0x58e   :  { %v1005_v10 = vrot.slane %v1004_v11, 2 }
 0x58f   :  { %v999_v38 = vadd.f32 %v998_v56, %v997_v61 }
 0x590   :  { %v1006_v53 = vadd.f32 %v1005_v10, %v1004_v11 }
 0x591   :  { %v1000_v47 = vrot.slane %v999_v38, 1 }
 0x592   :  { %v1007_v58 = vrot.slane %v1006_v53, 1 }
 0x593   :  { %v1001_v62 = vadd.f32 %v1000_v47, %v999_v38 }
 0x594   :  { %v1008_v54 = vadd.f32 %v1007_v58, %v1006_v53 }
 0x595   :  { %1097 = vrcp.f32 %v1001_v62 }
 0x596   :  { %1099 = vrcp.f32 %v1008_v54 }
 0x59b   :  { %v1098_v0 = vpop.eup %1097 }
 0x59c   :  { %v1100_v1 = vpop.eup %1099  ;;  %v1013_v15 = vmul.f32 %v1098_v0, %v1094_v18  ;;  %v1011_v59 = vmul.f32 %v1098_v0, %v1090_v40 }
 0x59d   :  { %v1014_v55 = vmul.f32 %v1100_v1, %v1096_v37  ;;  %v1012_v60 = vmul.f32 %v1100_v1, %v1092_v41 }
 0x59e   :  { %1017 = vst [vmem:[#allocation5 + $0x10] sm:$0xff] %v1013_v15 }
 0x59f   :  { %1018 = vst [vmem:[#allocation5 + $0x18] sm:$0xff] %v1014_v55 }
 0x5a0   :  { %1015 = vst [vmem:[#allocation5] sm:$0xff] %v1011_v59 }
 0x5a1   :  { %1016 = vst [vmem:[#allocation5 + $0x8] sm:$0xff] %v1012_v60 }
 0x5a2   :  { %1031 = dma.vmem_to_hbm [thread:$0]  %s1024_s9, 512, %s1026_s15, [#allocation4], %s1154_s18, %s1154_s18, %s1155_s19  }
 0x5a3   :  { %1151 = dma.done.wait [#allocation4], 512  }
 0x5a4   :  { %1152 = vsyncadd [#allocation4], 4294966784 }
 0x5a5   :  { %1036 = vsyncpa [#allocation3], 1 }
 0x5a6   :  { %1037 = vsyncpa [#allocation4], 1 }

</bundles_post_ra>
